<compile_context>
chip_gen: v7x
topology: tpu7x:2x2x1
jax: 0.10.0
libtpu: 0.0.40
codegen_flags: <defaults>
</compile_context>

<pallas_src>
import functools

import jax
import jax.numpy as jnp
import numpy as np
from jax.experimental import pallas as pl
from jax.experimental.pallas import tpu as pltpu


def _round_up(x, m):
    return (x + m - 1) // m * m


def gru_decoder_kernel(x_ref, h0_ref, wih_ref, bih_ref, whh_ref, bhh_ref,
                       wout_ref, bout_ref, logits_ref, gx_scr, hs_scr,
                       *, seq_len, batch_pad, hidden):
    """Fused GRU decoder: input proj + recurrence + output proj in one call.

    Gate column order in the fused weights (matches PyTorch weight_ih_l0 row
    order): [reset (r) | update (z) | new (n)].
    """
    S, Bp, H = seq_len, batch_pad, hidden

    # (1) Input projection for ALL time steps in one MXU matmul:
    #     (S*Bp, E) @ (E, 3H) -> (S*Bp, 3H)
    gx_scr[...] = (jnp.dot(x_ref[...], wih_ref[...],
                           preferred_element_type=jnp.float32)
                   + bih_ref[...])

    w_hh = whh_ref[...]     # (H, 3H) resident across the whole sequence
    b_hh = bhh_ref[...]     # (1, 3H)

    # (2) Sequential recurrence -- only h @ W_hh stays in the loop.
    #     S is small and static, so unroll at trace time (static, sublane-
    #     aligned slices; Bp is a multiple of 8).
    h = h0_ref[...]         # (Bp, H)
    for t in range(S):
        lo = t * Bp
        gx = gx_scr[lo:lo + Bp, :]                                  # (Bp, 3H)
        gh = jnp.dot(h, w_hh, preferred_element_type=jnp.float32) + b_hh
        r = jax.nn.sigmoid(gx[:, :H] + gh[:, :H])
        z = jax.nn.sigmoid(gx[:, H:2 * H] + gh[:, H:2 * H])
        n = jnp.tanh(gx[:, 2 * H:] + r * gh[:, 2 * H:])
        h = (1.0 - z) * n + z * h
        hs_scr[lo:lo + Bp, :] = h

    # (3) Output projection over all time steps in one MXU matmul:
    #     (S*Bp, H) @ (H, Vp) -> (S*Bp, Vp)   (Vp is a multiple of 128)
    logits_ref[...] = (jnp.dot(hs_scr[...], wout_ref[...],
                               preferred_element_type=jnp.float32)
                       + bout_ref[...])


def decoder_forward(tokens, hidden, params):
    """tokens: (B, S) int32, hidden: (1, B, H) float32 -> logits (B, S, V)."""
    B, S = tokens.shape
    E = params["embed"].shape[1]
    H = params["w_hh"].shape[0]
    V = params["w_out"].shape[1]

    Bp = _round_up(B, 8)      # sublane-aligned batch
    Vp = _round_up(V, 128)    # lane-dense logits (unmasked stores)

    # Embedding gather is glue (plain JAX).
    emb = params["embed"][tokens]                        # (B, S, E)
    x_tm = jnp.transpose(emb, (1, 0, 2))                 # (S, B, E) time-major
    x_tm = jnp.pad(x_tm, ((0, 0), (0, Bp - B), (0, 0)))  # pad batch
    x_flat = x_tm.reshape(S * Bp, E)                     # (S*Bp, E)

    h0 = jnp.pad(hidden[0], ((0, Bp - B), (0, 0)))       # (Bp, H)

    w_out = jnp.pad(params["w_out"], ((0, 0), (0, Vp - V)))   # (H, Vp)
    b_out = jnp.pad(params["b_out"], ((0, 0), (0, Vp - V)))   # (1, Vp)

    kernel = functools.partial(gru_decoder_kernel,
                               seq_len=S, batch_pad=Bp, hidden=H)

    logits_flat = pl.pallas_call(
        kernel,
        out_shape=jax.ShapeDtypeStruct((S * Bp, Vp), jnp.float32),
        grid_spec=pltpu.PrefetchScalarGridSpec(
            num_scalar_prefetch=0,
            grid=(1,),
            in_specs=[
                pl.BlockSpec((S * Bp, E), lambda i: (0, 0)),     # x (time-major)
                pl.BlockSpec((Bp, H), lambda i: (0, 0)),         # h0
                pl.BlockSpec((E, 3 * H), lambda i: (0, 0)),      # W_ih fused
                pl.BlockSpec((1, 3 * H), lambda i: (0, 0)),      # b_ih fused
                pl.BlockSpec((H, 3 * H), lambda i: (0, 0)),      # W_hh fused
                pl.BlockSpec((1, 3 * H), lambda i: (0, 0)),      # b_hh fused
                pl.BlockSpec((H, Vp), lambda i: (0, 0)),         # W_out (padded)
                pl.BlockSpec((1, Vp), lambda i: (0, 0)),         # b_out (padded)
            ],
            out_specs=pl.BlockSpec((S * Bp, Vp), lambda i: (0, 0)),
            scratch_shapes=[
                pltpu.VMEM((S * Bp, 3 * H), jnp.float32),   # gx for all steps
                pltpu.VMEM((S * Bp, H), jnp.float32),       # hidden states
            ],
        ),
        compiler_params=pltpu.CompilerParams(
            dimension_semantics=("arbitrary",)),   # recurrence is sequential
    )(x_flat, h0, params["w_ih"], params["b_ih"],
      params["w_hh"], params["b_hh"], w_out, b_out)

    logits = logits_flat.reshape(S, Bp, Vp)[:, :B, :V]    # drop padding
    return jnp.transpose(logits, (1, 0, 2))               # (B, S, V) batch_first


def reference_forward(tokens, hidden, params):
    """Pure-JAX reference with PyTorch GRU semantics (for verification)."""
    emb = params["embed"][tokens]                 # (B, S, E)
    x_tm = jnp.transpose(emb, (1, 0, 2))          # (S, B, E)
    H = params["w_hh"].shape[0]

    def step(h, x_t):
        gx = x_t @ params["w_ih"] + params["b_ih"]
        gh = h @ params["w_hh"] + params["b_hh"]
        r = jax.nn.sigmoid(gx[:, :H] + gh[:, :H])
        z = jax.nn.sigmoid(gx[:, H:2 * H] + gh[:, H:2 * H])
        n = jnp.tanh(gx[:, 2 * H:] + r * gh[:, 2 * H:])
        h_new = (1.0 - z) * n + z * h
        return h_new, h_new

    _, hs = jax.lax.scan(step, hidden[0], x_tm)   # hs: (S, B, H)
    logits_tm = hs @ params["w_out"] + params["b_out"]
    return jnp.transpose(logits_tm, (1, 0, 2))


def init_params(key, vocab_size, embed_size, hidden_size):
    ks = jax.random.split(key, 7)
    s = 1.0 / np.sqrt(hidden_size)
    return {
        "embed": jax.random.normal(ks[0], (vocab_size, embed_size),
                                   jnp.float32),
        # fused gate weights, column order [r | z | n]
        "w_ih": jax.random.uniform(ks[1], (embed_size, 3 * hidden_size),
                                   jnp.float32, -s, s),
        "w_hh": jax.random.uniform(ks[2], (hidden_size, 3 * hidden_size),
                                   jnp.float32, -s, s),
        "b_ih": jax.random.uniform(ks[3], (1, 3 * hidden_size),
                                   jnp.float32, -s, s),
        "b_hh": jax.random.uniform(ks[4], (1, 3 * hidden_size),
                                   jnp.float32, -s, s),
        "w_out": jax.random.uniform(ks[5], (hidden_size, vocab_size),
                                    jnp.float32, -s, s),
        "b_out": jax.random.uniform(ks[6], (1, vocab_size),
                                    jnp.float32, -s, s),
    }


if __name__ == "__main__":
    vocab_size, embed_size, hidden_size = 10, 16, 32
    batch, seq = 2, 8

    key = jax.random.PRNGKey(0)
    k_par, k_tok, k_hid = jax.random.split(key, 3)

    params = init_params(k_par, vocab_size, embed_size, hidden_size)
    tokens = jax.random.randint(k_tok, (batch, seq), 0, vocab_size, jnp.int32)
    hidden = jax.random.normal(k_hid, (1, batch, hidden_size), jnp.float32)

    logits = decoder_forward(tokens, hidden, params)
    logits = jax.block_until_ready(logits)

    expected = jax.block_until_ready(reference_forward(tokens, hidden, params))
    assert logits.shape == (batch, seq, vocab_size)
    np.testing.assert_allclose(np.asarray(logits), np.asarray(expected),
                               atol=1e-5, rtol=1e-5)

    print("KERNEL_OK")
</pallas_src>

<mosaic_0001>
module attributes {stable_mosaic.version = 11 : i64} {
  func.func @gru_decoder_kernel(%arg0: i32, %arg1: memref<64x16xf32, #tpu.memory_space<vmem>>, %arg2: memref<8x32xf32, #tpu.memory_space<vmem>>, %arg3: memref<16x96xf32, #tpu.memory_space<vmem>>, %arg4: memref<1x96xf32, #tpu.memory_space<vmem>>, %arg5: memref<32x96xf32, #tpu.memory_space<vmem>>, %arg6: memref<1x96xf32, #tpu.memory_space<vmem>>, %arg7: memref<32x128xf32, #tpu.memory_space<vmem>>, %arg8: memref<1x128xf32, #tpu.memory_space<vmem>>, %arg9: memref<64x128xf32, #tpu.memory_space<vmem>>, %arg10: memref<64x96xf32, #tpu.memory_space<vmem>>, %arg11: memref<64x32xf32, #tpu.memory_space<vmem>>) attributes {dimension_semantics = [#tpu.dimension_semantics<arbitrary>], iteration_bounds = array<i64: 1>, scalar_prefetch = 0 : i64, scratch_operands = 2 : i64, tpu.core_type = #tpu.core_type<tc>, window_params = [{pipeline_mode = #tpu.pipeline_mode<synchronous>, transform_indices = @transform_0, window_bounds = array<i64: 64, 16>}, {pipeline_mode = #tpu.pipeline_mode<synchronous>, transform_indices = @transform_1, window_bounds = array<i64: 8, 32>}, {pipeline_mode = #tpu.pipeline_mode<synchronous>, transform_indices = @transform_2, window_bounds = array<i64: 16, 96>}, {pipeline_mode = #tpu.pipeline_mode<synchronous>, transform_indices = @transform_3, window_bounds = array<i64: 1, 96>}, {pipeline_mode = #tpu.pipeline_mode<synchronous>, transform_indices = @transform_4, window_bounds = array<i64: 32, 96>}, {pipeline_mode = #tpu.pipeline_mode<synchronous>, transform_indices = @transform_5, window_bounds = array<i64: 1, 96>}, {pipeline_mode = #tpu.pipeline_mode<synchronous>, transform_indices = @transform_6, window_bounds = array<i64: 32, 128>}, {pipeline_mode = #tpu.pipeline_mode<synchronous>, transform_indices = @transform_7, window_bounds = array<i64: 1, 128>}, {pipeline_mode = #tpu.pipeline_mode<synchronous>, transform_indices = @transform_8, window_bounds = array<i64: 64, 128>}]} {
    %c0 = arith.constant 0 : index
    %c0_0 = arith.constant 0 : index
    %0 = vector.load %arg1[%c0, %c0_0] : memref<64x16xf32, #tpu.memory_space<vmem>>, vector<64x16xf32>
    %c0_1 = arith.constant 0 : index
    %c0_2 = arith.constant 0 : index
    %1 = vector.load %arg3[%c0_1, %c0_2] : memref<16x96xf32, #tpu.memory_space<vmem>>, vector<16x96xf32>
    %cst = arith.constant dense<0.000000e+00> : vector<64x96xf32>
    %2 = tpu.matmul %0, %1, %cst {dimension_numbers = #tpu.dot_dimension_numbers<[1], [0], [0], [1], [0, 0, 1, 1], [], []>} : vector<64x16xf32>, vector<16x96xf32>, vector<64x96xf32> -> vector<64x96xf32>
    %c0_3 = arith.constant 0 : index
    %c0_4 = arith.constant 0 : index
    %3 = vector.load %arg4[%c0_3, %c0_4] : memref<1x96xf32, #tpu.memory_space<vmem>>, vector<1x96xf32>
    %4 = vector.broadcast %3 : vector<1x96xf32> to vector<64x96xf32>
    %5 = arith.addf %2, %4 : vector<64x96xf32>
    %c0_5 = arith.constant 0 : index
    %c0_6 = arith.constant 0 : index
    %6 = vector.load %arg10[%c0_5, %c0_6] : memref<64x96xf32, #tpu.memory_space<vmem>>, vector<64x96xf32>
    tpu.vector_store %arg10[%c0_5, %c0_6], %5 {strides = array<i32>} : memref<64x96xf32, #tpu.memory_space<vmem>>, vector<64x96xf32>,
    %c0_7 = arith.constant 0 : index
    %c0_8 = arith.constant 0 : index
    %7 = vector.load %arg5[%c0_7, %c0_8] : memref<32x96xf32, #tpu.memory_space<vmem>>, vector<32x96xf32>
    %c0_9 = arith.constant 0 : index
    %c0_10 = arith.constant 0 : index
    %8 = vector.load %arg6[%c0_9, %c0_10] : memref<1x96xf32, #tpu.memory_space<vmem>>, vector<1x96xf32>
    %c0_11 = arith.constant 0 : index
    %c0_12 = arith.constant 0 : index
    %9 = vector.load %arg2[%c0_11, %c0_12] : memref<8x32xf32, #tpu.memory_space<vmem>>, vector<8x32xf32>
    %c0_13 = arith.constant 0 : index
    %c0_14 = arith.constant 0 : index
    %10 = vector.load %arg10[%c0_13, %c0_14] : memref<64x96xf32, #tpu.memory_space<vmem>>, vector<8x96xf32>
    %cst_15 = arith.constant dense<0.000000e+00> : vector<8x96xf32>
    %11 = tpu.matmul %9, %7, %cst_15 {dimension_numbers = #tpu.dot_dimension_numbers<[1], [0], [0], [1], [0, 0, 1, 1], [], []>} : vector<8x32xf32>, vector<32x96xf32>, vector<8x96xf32> -> vector<8x96xf32>
    %12 = vector.broadcast %8 : vector<1x96xf32> to vector<8x96xf32>
    %13 = arith.addf %11, %12 : vector<8x96xf32>
    %14 = vector.extract_strided_slice %10 {offsets = [0, 0], sizes = [8, 32], strides = [1, 1]} : vector<8x96xf32> to vector<8x32xf32>
    %15 = vector.extract_strided_slice %13 {offsets = [0, 0], sizes = [8, 32], strides = [1, 1]} : vector<8x96xf32> to vector<8x32xf32>
    %16 = arith.addf %14, %15 : vector<8x32xf32>
    %17 = arith.negf %16 : vector<8x32xf32>
    %18 = math.exp %17 : vector<8x32xf32>
    %cst_16 = arith.constant 1.000000e+00 : f32
    %19 = vector.broadcast %cst_16 : f32 to vector<8x32xf32>
    %20 = arith.addf %19, %18 : vector<8x32xf32>
    %21 = arith.divf %19, %20 : vector<8x32xf32>
    %22 = vector.extract_strided_slice %10 {offsets = [0, 32], sizes = [8, 32], strides = [1, 1]} : vector<8x96xf32> to vector<8x32xf32>
    %23 = vector.extract_strided_slice %13 {offsets = [0, 32], sizes = [8, 32], strides = [1, 1]} : vector<8x96xf32> to vector<8x32xf32>
    %24 = arith.addf %22, %23 : vector<8x32xf32>
    %25 = arith.negf %24 : vector<8x32xf32>
    %26 = math.exp %25 : vector<8x32xf32>
    %cst_17 = arith.constant 1.000000e+00 : f32
    %27 = vector.broadcast %cst_17 : f32 to vector<8x32xf32>
    %28 = arith.addf %27, %26 : vector<8x32xf32>
    %29 = arith.divf %27, %28 : vector<8x32xf32>
    %30 = vector.extract_strided_slice %10 {offsets = [0, 64], sizes = [8, 32], strides = [1, 1]} : vector<8x96xf32> to vector<8x32xf32>
    %31 = vector.extract_strided_slice %13 {offsets = [0, 64], sizes = [8, 32], strides = [1, 1]} : vector<8x96xf32> to vector<8x32xf32>
    %32 = arith.mulf %21, %31 : vector<8x32xf32>
    %33 = arith.addf %30, %32 : vector<8x32xf32>
    %34 = math.tanh %33 : vector<8x32xf32>
    %cst_18 = arith.constant 1.000000e+00 : f32
    %35 = vector.broadcast %cst_18 : f32 to vector<8x32xf32>
    %36 = arith.subf %35, %29 : vector<8x32xf32>
    %37 = arith.mulf %36, %34 : vector<8x32xf32>
    %38 = arith.mulf %29, %9 : vector<8x32xf32>
    %39 = arith.addf %37, %38 : vector<8x32xf32>
    %c0_19 = arith.constant 0 : index
    %c0_20 = arith.constant 0 : index
    %40 = vector.load %arg11[%c0_19, %c0_20] : memref<64x32xf32, #tpu.memory_space<vmem>>, vector<8x32xf32>
    tpu.vector_store %arg11[%c0_19, %c0_20], %39 {strides = array<i32>} : memref<64x32xf32, #tpu.memory_space<vmem>>, vector<8x32xf32>,
    %c8 = arith.constant 8 : index
    %c0_21 = arith.constant 0 : index
    %41 = vector.load %arg10[%c8, %c0_21] : memref<64x96xf32, #tpu.memory_space<vmem>>, vector<8x96xf32>
    %cst_22 = arith.constant dense<0.000000e+00> : vector<8x96xf32>
    %42 = tpu.matmul %39, %7, %cst_22 {dimension_numbers = #tpu.dot_dimension_numbers<[1], [0], [0], [1], [0, 0, 1, 1], [], []>} : vector<8x32xf32>, vector<32x96xf32>, vector<8x96xf32> -> vector<8x96xf32>
    %43 = vector.broadcast %8 : vector<1x96xf32> to vector<8x96xf32>
    %44 = arith.addf %42, %43 : vector<8x96xf32>
    %45 = vector.extract_strided_slice %41 {offsets = [0, 0], sizes = [8, 32], strides = [1, 1]} : vector<8x96xf32> to vector<8x32xf32>
    %46 = vector.extract_strided_slice %44 {offsets = [0, 0], sizes = [8, 32], strides = [1, 1]} : vector<8x96xf32> to vector<8x32xf32>
    %47 = arith.addf %45, %46 : vector<8x32xf32>
    %48 = arith.negf %47 : vector<8x32xf32>
    %49 = math.exp %48 : vector<8x32xf32>
    %cst_23 = arith.constant 1.000000e+00 : f32
    %50 = vector.broadcast %cst_23 : f32 to vector<8x32xf32>
    %51 = arith.addf %50, %49 : vector<8x32xf32>
    %52 = arith.divf %50, %51 : vector<8x32xf32>
    %53 = vector.extract_strided_slice %41 {offsets = [0, 32], sizes = [8, 32], strides = [1, 1]} : vector<8x96xf32> to vector<8x32xf32>
    %54 = vector.extract_strided_slice %44 {offsets = [0, 32], sizes = [8, 32], strides = [1, 1]} : vector<8x96xf32> to vector<8x32xf32>
    %55 = arith.addf %53, %54 : vector<8x32xf32>
    %56 = arith.negf %55 : vector<8x32xf32>
    %57 = math.exp %56 : vector<8x32xf32>
    %cst_24 = arith.constant 1.000000e+00 : f32
    %58 = vector.broadcast %cst_24 : f32 to vector<8x32xf32>
    %59 = arith.addf %58, %57 : vector<8x32xf32>
    %60 = arith.divf %58, %59 : vector<8x32xf32>
    %61 = vector.extract_strided_slice %41 {offsets = [0, 64], sizes = [8, 32], strides = [1, 1]} : vector<8x96xf32> to vector<8x32xf32>
    %62 = vector.extract_strided_slice %44 {offsets = [0, 64], sizes = [8, 32], strides = [1, 1]} : vector<8x96xf32> to vector<8x32xf32>
    %63 = arith.mulf %52, %62 : vector<8x32xf32>
    %64 = arith.addf %61, %63 : vector<8x32xf32>
    %65 = math.tanh %64 : vector<8x32xf32>
    %cst_25 = arith.constant 1.000000e+00 : f32
    %66 = vector.broadcast %cst_25 : f32 to vector<8x32xf32>
    %67 = arith.subf %66, %60 : vector<8x32xf32>
    %68 = arith.mulf %67, %65 : vector<8x32xf32>
    %69 = arith.mulf %60, %39 : vector<8x32xf32>
    %70 = arith.addf %68, %69 : vector<8x32xf32>
    %c8_26 = arith.constant 8 : index
    %c0_27 = arith.constant 0 : index
    %71 = vector.load %arg11[%c8_26, %c0_27] : memref<64x32xf32, #tpu.memory_space<vmem>>, vector<8x32xf32>
    tpu.vector_store %arg11[%c8_26, %c0_27], %70 {strides = array<i32>} : memref<64x32xf32, #tpu.memory_space<vmem>>, vector<8x32xf32>,
    %c16 = arith.constant 16 : index
    %c0_28 = arith.constant 0 : index
    %72 = vector.load %arg10[%c16, %c0_28] : memref<64x96xf32, #tpu.memory_space<vmem>>, vector<8x96xf32>
    %cst_29 = arith.constant dense<0.000000e+00> : vector<8x96xf32>
    %73 = tpu.matmul %70, %7, %cst_29 {dimension_numbers = #tpu.dot_dimension_numbers<[1], [0], [0], [1], [0, 0, 1, 1], [], []>} : vector<8x32xf32>, vector<32x96xf32>, vector<8x96xf32> -> vector<8x96xf32>
    %74 = vector.broadcast %8 : vector<1x96xf32> to vector<8x96xf32>
    %75 = arith.addf %73, %74 : vector<8x96xf32>
    %76 = vector.extract_strided_slice %72 {offsets = [0, 0], sizes = [8, 32], strides = [1, 1]} : vector<8x96xf32> to vector<8x32xf32>
    %77 = vector.extract_strided_slice %75 {offsets = [0, 0], sizes = [8, 32], strides = [1, 1]} : vector<8x96xf32> to vector<8x32xf32>
    %78 = arith.addf %76, %77 : vector<8x32xf32>
    %79 = arith.negf %78 : vector<8x32xf32>
    %80 = math.exp %79 : vector<8x32xf32>
    %cst_30 = arith.constant 1.000000e+00 : f32
    %81 = vector.broadcast %cst_30 : f32 to vector<8x32xf32>
    %82 = arith.addf %81, %80 : vector<8x32xf32>
    %83 = arith.divf %81, %82 : vector<8x32xf32>
    %84 = vector.extract_strided_slice %72 {offsets = [0, 32], sizes = [8, 32], strides = [1, 1]} : vector<8x96xf32> to vector<8x32xf32>
    %85 = vector.extract_strided_slice %75 {offsets = [0, 32], sizes = [8, 32], strides = [1, 1]} : vector<8x96xf32> to vector<8x32xf32>
    %86 = arith.addf %84, %85 : vector<8x32xf32>
    %87 = arith.negf %86 : vector<8x32xf32>
    %88 = math.exp %87 : vector<8x32xf32>
    %cst_31 = arith.constant 1.000000e+00 : f32
    %89 = vector.broadcast %cst_31 : f32 to vector<8x32xf32>
    %90 = arith.addf %89, %88 : vector<8x32xf32>
    %91 = arith.divf %89, %90 : vector<8x32xf32>
    %92 = vector.extract_strided_slice %72 {offsets = [0, 64], sizes = [8, 32], strides = [1, 1]} : vector<8x96xf32> to vector<8x32xf32>
    %93 = vector.extract_strided_slice %75 {offsets = [0, 64], sizes = [8, 32], strides = [1, 1]} : vector<8x96xf32> to vector<8x32xf32>
    %94 = arith.mulf %83, %93 : vector<8x32xf32>
    %95 = arith.addf %92, %94 : vector<8x32xf32>
    %96 = math.tanh %95 : vector<8x32xf32>
    %cst_32 = arith.constant 1.000000e+00 : f32
    %97 = vector.broadcast %cst_32 : f32 to vector<8x32xf32>
    %98 = arith.subf %97, %91 : vector<8x32xf32>
    %99 = arith.mulf %98, %96 : vector<8x32xf32>
    %100 = arith.mulf %91, %70 : vector<8x32xf32>
    %101 = arith.addf %99, %100 : vector<8x32xf32>
    %c16_33 = arith.constant 16 : index
    %c0_34 = arith.constant 0 : index
    %102 = vector.load %arg11[%c16_33, %c0_34] : memref<64x32xf32, #tpu.memory_space<vmem>>, vector<8x32xf32>
    tpu.vector_store %arg11[%c16_33, %c0_34], %101 {strides = array<i32>} : memref<64x32xf32, #tpu.memory_space<vmem>>, vector<8x32xf32>,
    %c24 = arith.constant 24 : index
    %c0_35 = arith.constant 0 : index
    %103 = vector.load %arg10[%c24, %c0_35] : memref<64x96xf32, #tpu.memory_space<vmem>>, vector<8x96xf32>
    %cst_36 = arith.constant dense<0.000000e+00> : vector<8x96xf32>
    %104 = tpu.matmul %101, %7, %cst_36 {dimension_numbers = #tpu.dot_dimension_numbers<[1], [0], [0], [1], [0, 0, 1, 1], [], []>} : vector<8x32xf32>, vector<32x96xf32>, vector<8x96xf32> -> vector<8x96xf32>
    %105 = vector.broadcast %8 : vector<1x96xf32> to vector<8x96xf32>
    %106 = arith.addf %104, %105 : vector<8x96xf32>
    %107 = vector.extract_strided_slice %103 {offsets = [0, 0], sizes = [8, 32], strides = [1, 1]} : vector<8x96xf32> to vector<8x32xf32>
    %108 = vector.extract_strided_slice %106 {offsets = [0, 0], sizes = [8, 32], strides = [1, 1]} : vector<8x96xf32> to vector<8x32xf32>
    %109 = arith.addf %107, %108 : vector<8x32xf32>
    %110 = arith.negf %109 : vector<8x32xf32>
    %111 = math.exp %110 : vector<8x32xf32>
    %cst_37 = arith.constant 1.000000e+00 : f32
    %112 = vector.broadcast %cst_37 : f32 to vector<8x32xf32>
    %113 = arith.addf %112, %111 : vector<8x32xf32>
    %114 = arith.divf %112, %113 : vector<8x32xf32>
    %115 = vector.extract_strided_slice %103 {offsets = [0, 32], sizes = [8, 32], strides = [1, 1]} : vector<8x96xf32> to vector<8x32xf32>
    %116 = vector.extract_strided_slice %106 {offsets = [0, 32], sizes = [8, 32], strides = [1, 1]} : vector<8x96xf32> to vector<8x32xf32>
    %117 = arith.addf %115, %116 : vector<8x32xf32>
    %118 = arith.negf %117 : vector<8x32xf32>
    %119 = math.exp %118 : vector<8x32xf32>
    %cst_38 = arith.constant 1.000000e+00 : f32
    %120 = vector.broadcast %cst_38 : f32 to vector<8x32xf32>
    %121 = arith.addf %120, %119 : vector<8x32xf32>
    %122 = arith.divf %120, %121 : vector<8x32xf32>
    %123 = vector.extract_strided_slice %103 {offsets = [0, 64], sizes = [8, 32], strides = [1, 1]} : vector<8x96xf32> to vector<8x32xf32>
    %124 = vector.extract_strided_slice %106 {offsets = [0, 64], sizes = [8, 32], strides = [1, 1]} : vector<8x96xf32> to vector<8x32xf32>
    %125 = arith.mulf %114, %124 : vector<8x32xf32>
    %126 = arith.addf %123, %125 : vector<8x32xf32>
    %127 = math.tanh %126 : vector<8x32xf32>
    %cst_39 = arith.constant 1.000000e+00 : f32
    %128 = vector.broadcast %cst_39 : f32 to vector<8x32xf32>
    %129 = arith.subf %128, %122 : vector<8x32xf32>
    %130 = arith.mulf %129, %127 : vector<8x32xf32>
    %131 = arith.mulf %122, %101 : vector<8x32xf32>
    %132 = arith.addf %130, %131 : vector<8x32xf32>
    %c24_40 = arith.constant 24 : index
    %c0_41 = arith.constant 0 : index
    %133 = vector.load %arg11[%c24_40, %c0_41] : memref<64x32xf32, #tpu.memory_space<vmem>>, vector<8x32xf32>
    tpu.vector_store %arg11[%c24_40, %c0_41], %132 {strides = array<i32>} : memref<64x32xf32, #tpu.memory_space<vmem>>, vector<8x32xf32>,
    %c32 = arith.constant 32 : index
    %c0_42 = arith.constant 0 : index
    %134 = vector.load %arg10[%c32, %c0_42] : memref<64x96xf32, #tpu.memory_space<vmem>>, vector<8x96xf32>
    %cst_43 = arith.constant dense<0.000000e+00> : vector<8x96xf32>
    %135 = tpu.matmul %132, %7, %cst_43 {dimension_numbers = #tpu.dot_dimension_numbers<[1], [0], [0], [1], [0, 0, 1, 1], [], []>} : vector<8x32xf32>, vector<32x96xf32>, vector<8x96xf32> -> vector<8x96xf32>
    %136 = vector.broadcast %8 : vector<1x96xf32> to vector<8x96xf32>
    %137 = arith.addf %135, %136 : vector<8x96xf32>
    %138 = vector.extract_strided_slice %134 {offsets = [0, 0], sizes = [8, 32], strides = [1, 1]} : vector<8x96xf32> to vector<8x32xf32>
    %139 = vector.extract_strided_slice %137 {offsets = [0, 0], sizes = [8, 32], strides = [1, 1]} : vector<8x96xf32> to vector<8x32xf32>
    %140 = arith.addf %138, %139 : vector<8x32xf32>
    %141 = arith.negf %140 : vector<8x32xf32>
    %142 = math.exp %141 : vector<8x32xf32>
    %cst_44 = arith.constant 1.000000e+00 : f32
    %143 = vector.broadcast %cst_44 : f32 to vector<8x32xf32>
    %144 = arith.addf %143, %142 : vector<8x32xf32>
    %145 = arith.divf %143, %144 : vector<8x32xf32>
    %146 = vector.extract_strided_slice %134 {offsets = [0, 32], sizes = [8, 32], strides = [1, 1]} : vector<8x96xf32> to vector<8x32xf32>
    %147 = vector.extract_strided_slice %137 {offsets = [0, 32], sizes = [8, 32], strides = [1, 1]} : vector<8x96xf32> to vector<8x32xf32>
    %148 = arith.addf %146, %147 : vector<8x32xf32>
    %149 = arith.negf %148 : vector<8x32xf32>
    %150 = math.exp %149 : vector<8x32xf32>
    %cst_45 = arith.constant 1.000000e+00 : f32
    %151 = vector.broadcast %cst_45 : f32 to vector<8x32xf32>
    %152 = arith.addf %151, %150 : vector<8x32xf32>
    %153 = arith.divf %151, %152 : vector<8x32xf32>
    %154 = vector.extract_strided_slice %134 {offsets = [0, 64], sizes = [8, 32], strides = [1, 1]} : vector<8x96xf32> to vector<8x32xf32>
    %155 = vector.extract_strided_slice %137 {offsets = [0, 64], sizes = [8, 32], strides = [1, 1]} : vector<8x96xf32> to vector<8x32xf32>
    %156 = arith.mulf %145, %155 : vector<8x32xf32>
    %157 = arith.addf %154, %156 : vector<8x32xf32>
    %158 = math.tanh %157 : vector<8x32xf32>
    %cst_46 = arith.constant 1.000000e+00 : f32
    %159 = vector.broadcast %cst_46 : f32 to vector<8x32xf32>
    %160 = arith.subf %159, %153 : vector<8x32xf32>
    %161 = arith.mulf %160, %158 : vector<8x32xf32>
    %162 = arith.mulf %153, %132 : vector<8x32xf32>
    %163 = arith.addf %161, %162 : vector<8x32xf32>
    %c32_47 = arith.constant 32 : index
    %c0_48 = arith.constant 0 : index
    %164 = vector.load %arg11[%c32_47, %c0_48] : memref<64x32xf32, #tpu.memory_space<vmem>>, vector<8x32xf32>
    tpu.vector_store %arg11[%c32_47, %c0_48], %163 {strides = array<i32>} : memref<64x32xf32, #tpu.memory_space<vmem>>, vector<8x32xf32>,
    %c40 = arith.constant 40 : index
    %c0_49 = arith.constant 0 : index
    %165 = vector.load %arg10[%c40, %c0_49] : memref<64x96xf32, #tpu.memory_space<vmem>>, vector<8x96xf32>
    %cst_50 = arith.constant dense<0.000000e+00> : vector<8x96xf32>
    %166 = tpu.matmul %163, %7, %cst_50 {dimension_numbers = #tpu.dot_dimension_numbers<[1], [0], [0], [1], [0, 0, 1, 1], [], []>} : vector<8x32xf32>, vector<32x96xf32>, vector<8x96xf32> -> vector<8x96xf32>
    %167 = vector.broadcast %8 : vector<1x96xf32> to vector<8x96xf32>
    %168 = arith.addf %166, %167 : vector<8x96xf32>
    %169 = vector.extract_strided_slice %165 {offsets = [0, 0], sizes = [8, 32], strides = [1, 1]} : vector<8x96xf32> to vector<8x32xf32>
    %170 = vector.extract_strided_slice %168 {offsets = [0, 0], sizes = [8, 32], strides = [1, 1]} : vector<8x96xf32> to vector<8x32xf32>
    %171 = arith.addf %169, %170 : vector<8x32xf32>
    %172 = arith.negf %171 : vector<8x32xf32>
    %173 = math.exp %172 : vector<8x32xf32>
    %cst_51 = arith.constant 1.000000e+00 : f32
    %174 = vector.broadcast %cst_51 : f32 to vector<8x32xf32>
    %175 = arith.addf %174, %173 : vector<8x32xf32>
    %176 = arith.divf %174, %175 : vector<8x32xf32>
    %177 = vector.extract_strided_slice %165 {offsets = [0, 32], sizes = [8, 32], strides = [1, 1]} : vector<8x96xf32> to vector<8x32xf32>
    %178 = vector.extract_strided_slice %168 {offsets = [0, 32], sizes = [8, 32], strides = [1, 1]} : vector<8x96xf32> to vector<8x32xf32>
    %179 = arith.addf %177, %178 : vector<8x32xf32>
    %180 = arith.negf %179 : vector<8x32xf32>
    %181 = math.exp %180 : vector<8x32xf32>
    %cst_52 = arith.constant 1.000000e+00 : f32
    %182 = vector.broadcast %cst_52 : f32 to vector<8x32xf32>
    %183 = arith.addf %182, %181 : vector<8x32xf32>
    %184 = arith.divf %182, %183 : vector<8x32xf32>
    %185 = vector.extract_strided_slice %165 {offsets = [0, 64], sizes = [8, 32], strides = [1, 1]} : vector<8x96xf32> to vector<8x32xf32>
    %186 = vector.extract_strided_slice %168 {offsets = [0, 64], sizes = [8, 32], strides = [1, 1]} : vector<8x96xf32> to vector<8x32xf32>
    %187 = arith.mulf %176, %186 : vector<8x32xf32>
    %188 = arith.addf %185, %187 : vector<8x32xf32>
    %189 = math.tanh %188 : vector<8x32xf32>
    %cst_53 = arith.constant 1.000000e+00 : f32
    %190 = vector.broadcast %cst_53 : f32 to vector<8x32xf32>
    %191 = arith.subf %190, %184 : vector<8x32xf32>
    %192 = arith.mulf %191, %189 : vector<8x32xf32>
    %193 = arith.mulf %184, %163 : vector<8x32xf32>
    %194 = arith.addf %192, %193 : vector<8x32xf32>
    %c40_54 = arith.constant 40 : index
    %c0_55 = arith.constant 0 : index
    %195 = vector.load %arg11[%c40_54, %c0_55] : memref<64x32xf32, #tpu.memory_space<vmem>>, vector<8x32xf32>
    tpu.vector_store %arg11[%c40_54, %c0_55], %194 {strides = array<i32>} : memref<64x32xf32, #tpu.memory_space<vmem>>, vector<8x32xf32>,
    %c48 = arith.constant 48 : index
    %c0_56 = arith.constant 0 : index
    %196 = vector.load %arg10[%c48, %c0_56] : memref<64x96xf32, #tpu.memory_space<vmem>>, vector<8x96xf32>
    %cst_57 = arith.constant dense<0.000000e+00> : vector<8x96xf32>
    %197 = tpu.matmul %194, %7, %cst_57 {dimension_numbers = #tpu.dot_dimension_numbers<[1], [0], [0], [1], [0, 0, 1, 1], [], []>} : vector<8x32xf32>, vector<32x96xf32>, vector<8x96xf32> -> vector<8x96xf32>
    %198 = vector.broadcast %8 : vector<1x96xf32> to vector<8x96xf32>
    %199 = arith.addf %197, %198 : vector<8x96xf32>
    %200 = vector.extract_strided_slice %196 {offsets = [0, 0], sizes = [8, 32], strides = [1, 1]} : vector<8x96xf32> to vector<8x32xf32>
    %201 = vector.extract_strided_slice %199 {offsets = [0, 0], sizes = [8, 32], strides = [1, 1]} : vector<8x96xf32> to vector<8x32xf32>
    %202 = arith.addf %200, %201 : vector<8x32xf32>
    %203 = arith.negf %202 : vector<8x32xf32>
    %204 = math.exp %203 : vector<8x32xf32>
    %cst_58 = arith.constant 1.000000e+00 : f32
    %205 = vector.broadcast %cst_58 : f32 to vector<8x32xf32>
    %206 = arith.addf %205, %204 : vector<8x32xf32>
    %207 = arith.divf %205, %206 : vector<8x32xf32>
    %208 = vector.extract_strided_slice %196 {offsets = [0, 32], sizes = [8, 32], strides = [1, 1]} : vector<8x96xf32> to vector<8x32xf32>
    %209 = vector.extract_strided_slice %199 {offsets = [0, 32], sizes = [8, 32], strides = [1, 1]} : vector<8x96xf32> to vector<8x32xf32>
    %210 = arith.addf %208, %209 : vector<8x32xf32>
    %211 = arith.negf %210 : vector<8x32xf32>
    %212 = math.exp %211 : vector<8x32xf32>
    %cst_59 = arith.constant 1.000000e+00 : f32
    %213 = vector.broadcast %cst_59 : f32 to vector<8x32xf32>
    %214 = arith.addf %213, %212 : vector<8x32xf32>
    %215 = arith.divf %213, %214 : vector<8x32xf32>
    %216 = vector.extract_strided_slice %196 {offsets = [0, 64], sizes = [8, 32], strides = [1, 1]} : vector<8x96xf32> to vector<8x32xf32>
    %217 = vector.extract_strided_slice %199 {offsets = [0, 64], sizes = [8, 32], strides = [1, 1]} : vector<8x96xf32> to vector<8x32xf32>
    %218 = arith.mulf %207, %217 : vector<8x32xf32>
    %219 = arith.addf %216, %218 : vector<8x32xf32>
    %220 = math.tanh %219 : vector<8x32xf32>
    %cst_60 = arith.constant 1.000000e+00 : f32
    %221 = vector.broadcast %cst_60 : f32 to vector<8x32xf32>
    %222 = arith.subf %221, %215 : vector<8x32xf32>
    %223 = arith.mulf %222, %220 : vector<8x32xf32>
    %224 = arith.mulf %215, %194 : vector<8x32xf32>
    %225 = arith.addf %223, %224 : vector<8x32xf32>
    %c48_61 = arith.constant 48 : index
    %c0_62 = arith.constant 0 : index
    %226 = vector.load %arg11[%c48_61, %c0_62] : memref<64x32xf32, #tpu.memory_space<vmem>>, vector<8x32xf32>
    tpu.vector_store %arg11[%c48_61, %c0_62], %225 {strides = array<i32>} : memref<64x32xf32, #tpu.memory_space<vmem>>, vector<8x32xf32>,
    %c56 = arith.constant 56 : index
    %c0_63 = arith.constant 0 : index
    %227 = vector.load %arg10[%c56, %c0_63] : memref<64x96xf32, #tpu.memory_space<vmem>>, vector<8x96xf32>
    %cst_64 = arith.constant dense<0.000000e+00> : vector<8x96xf32>
    %228 = tpu.matmul %225, %7, %cst_64 {dimension_numbers = #tpu.dot_dimension_numbers<[1], [0], [0], [1], [0, 0, 1, 1], [], []>} : vector<8x32xf32>, vector<32x96xf32>, vector<8x96xf32> -> vector<8x96xf32>
    %229 = vector.broadcast %8 : vector<1x96xf32> to vector<8x96xf32>
    %230 = arith.addf %228, %229 : vector<8x96xf32>
    %231 = vector.extract_strided_slice %227 {offsets = [0, 0], sizes = [8, 32], strides = [1, 1]} : vector<8x96xf32> to vector<8x32xf32>
    %232 = vector.extract_strided_slice %230 {offsets = [0, 0], sizes = [8, 32], strides = [1, 1]} : vector<8x96xf32> to vector<8x32xf32>
    %233 = arith.addf %231, %232 : vector<8x32xf32>
    %234 = arith.negf %233 : vector<8x32xf32>
    %235 = math.exp %234 : vector<8x32xf32>
    %cst_65 = arith.constant 1.000000e+00 : f32
    %236 = vector.broadcast %cst_65 : f32 to vector<8x32xf32>
    %237 = arith.addf %236, %235 : vector<8x32xf32>
    %238 = arith.divf %236, %237 : vector<8x32xf32>
    %239 = vector.extract_strided_slice %227 {offsets = [0, 32], sizes = [8, 32], strides = [1, 1]} : vector<8x96xf32> to vector<8x32xf32>
    %240 = vector.extract_strided_slice %230 {offsets = [0, 32], sizes = [8, 32], strides = [1, 1]} : vector<8x96xf32> to vector<8x32xf32>
    %241 = arith.addf %239, %240 : vector<8x32xf32>
    %242 = arith.negf %241 : vector<8x32xf32>
    %243 = math.exp %242 : vector<8x32xf32>
    %cst_66 = arith.constant 1.000000e+00 : f32
    %244 = vector.broadcast %cst_66 : f32 to vector<8x32xf32>
    %245 = arith.addf %244, %243 : vector<8x32xf32>
    %246 = arith.divf %244, %245 : vector<8x32xf32>
    %247 = vector.extract_strided_slice %227 {offsets = [0, 64], sizes = [8, 32], strides = [1, 1]} : vector<8x96xf32> to vector<8x32xf32>
    %248 = vector.extract_strided_slice %230 {offsets = [0, 64], sizes = [8, 32], strides = [1, 1]} : vector<8x96xf32> to vector<8x32xf32>
    %249 = arith.mulf %238, %248 : vector<8x32xf32>
    %250 = arith.addf %247, %249 : vector<8x32xf32>
    %251 = math.tanh %250 : vector<8x32xf32>
    %cst_67 = arith.constant 1.000000e+00 : f32
    %252 = vector.broadcast %cst_67 : f32 to vector<8x32xf32>
    %253 = arith.subf %252, %246 : vector<8x32xf32>
    %254 = arith.mulf %253, %251 : vector<8x32xf32>
    %255 = arith.mulf %246, %225 : vector<8x32xf32>
    %256 = arith.addf %254, %255 : vector<8x32xf32>
    %c56_68 = arith.constant 56 : index
    %c0_69 = arith.constant 0 : index
    %257 = vector.load %arg11[%c56_68, %c0_69] : memref<64x32xf32, #tpu.memory_space<vmem>>, vector<8x32xf32>
    tpu.vector_store %arg11[%c56_68, %c0_69], %256 {strides = array<i32>} : memref<64x32xf32, #tpu.memory_space<vmem>>, vector<8x32xf32>,
    %c0_70 = arith.constant 0 : index
    %c0_71 = arith.constant 0 : index
    %258 = vector.load %arg11[%c0_70, %c0_71] : memref<64x32xf32, #tpu.memory_space<vmem>>, vector<64x32xf32>
    %c0_72 = arith.constant 0 : index
    %c0_73 = arith.constant 0 : index
    %259 = vector.load %arg7[%c0_72, %c0_73] : memref<32x128xf32, #tpu.memory_space<vmem>>, vector<32x128xf32>
    %cst_74 = arith.constant dense<0.000000e+00> : vector<64x128xf32>
    %260 = tpu.matmul %258, %259, %cst_74 {dimension_numbers = #tpu.dot_dimension_numbers<[1], [0], [0], [1], [0, 0, 1, 1], [], []>} : vector<64x32xf32>, vector<32x128xf32>, vector<64x128xf32> -> vector<64x128xf32>
    %c0_75 = arith.constant 0 : index
    %c0_76 = arith.constant 0 : index
    %261 = vector.load %arg8[%c0_75, %c0_76] : memref<1x128xf32, #tpu.memory_space<vmem>>, vector<1x128xf32>
    %262 = vector.broadcast %261 : vector<1x128xf32> to vector<64x128xf32>
    %263 = arith.addf %260, %262 : vector<64x128xf32>
    %c0_77 = arith.constant 0 : index
    %c0_78 = arith.constant 0 : index
    %264 = vector.load %arg9[%c0_77, %c0_78] : memref<64x128xf32, #tpu.memory_space<vmem>>, vector<64x128xf32>
    tpu.vector_store %arg9[%c0_77, %c0_78], %263 {strides = array<i32>} : memref<64x128xf32, #tpu.memory_space<vmem>>, vector<64x128xf32>,
    return
  }
  func.func @transform_0(%arg0: i32) -> (i32, i32) {
    %c0_i32 = arith.constant 0 : i32
    %c0_i32_0 = arith.constant 0 : i32
    %c0_i32_1 = arith.constant 0 : i32
    return %c0_i32, %c0_i32_0 : i32, i32
  }
  func.func @transform_1(%arg0: i32) -> (i32, i32) {
    %c0_i32 = arith.constant 0 : i32
    %c0_i32_0 = arith.constant 0 : i32
    %c0_i32_1 = arith.constant 0 : i32
    return %c0_i32, %c0_i32_0 : i32, i32
  }
  func.func @transform_2(%arg0: i32) -> (i32, i32) {
    %c0_i32 = arith.constant 0 : i32
    %c0_i32_0 = arith.constant 0 : i32
    %c0_i32_1 = arith.constant 0 : i32
    return %c0_i32, %c0_i32_0 : i32, i32
  }
  func.func @transform_3(%arg0: i32) -> (i32, i32) {
    %c0_i32 = arith.constant 0 : i32
    %c0_i32_0 = arith.constant 0 : i32
    %c0_i32_1 = arith.constant 0 : i32
    return %c0_i32, %c0_i32_0 : i32, i32
  }
  func.func @transform_4(%arg0: i32) -> (i32, i32) {
    %c0_i32 = arith.constant 0 : i32
    %c0_i32_0 = arith.constant 0 : i32
    %c0_i32_1 = arith.constant 0 : i32
    return %c0_i32, %c0_i32_0 : i32, i32
  }
  func.func @transform_5(%arg0: i32) -> (i32, i32) {
    %c0_i32 = arith.constant 0 : i32
    %c0_i32_0 = arith.constant 0 : i32
    %c0_i32_1 = arith.constant 0 : i32
    return %c0_i32, %c0_i32_0 : i32, i32
  }
  func.func @transform_6(%arg0: i32) -> (i32, i32) {
    %c0_i32 = arith.constant 0 : i32
    %c0_i32_0 = arith.constant 0 : i32
    %c0_i32_1 = arith.constant 0 : i32
    return %c0_i32, %c0_i32_0 : i32, i32
  }
  func.func @transform_7(%arg0: i32) -> (i32, i32) {
    %c0_i32 = arith.constant 0 : i32
    %c0_i32_0 = arith.constant 0 : i32
    %c0_i32_1 = arith.constant 0 : i32
    return %c0_i32, %c0_i32_0 : i32, i32
  }
  func.func @transform_8(%arg0: i32) -> (i32, i32) {
    %c0_i32 = arith.constant 0 : i32
    %c0_i32_0 = arith.constant 0 : i32
    %c0_i32_1 = arith.constant 0 : i32
    return %c0_i32, %c0_i32_0 : i32, i32
  }
}

</mosaic_0001>

<bundles_post_ra>
// kernel: tpu_custom_call.1
= control target key start
LH: loop header
LB: loop body
LE: loop exit
PB: predicated region body
PF: predicated region fallthrough
CT: control target
= control target key end

     0   :  { %13 = vsyncpa [#allocation5], 0  ;;  %s1909_s0 = inlined_call_operand.vmem [shape: f32[64,16], index: 0, kind: input, shape index: {}]   ;;  %s1910_s1 = inlined_call_operand.hbm [shape: f32[8,32], index: 1, kind: input, shape index: {}]   ;;  %s1911_s2 = inlined_call_operand.vmem [shape: f32[16,96], index: 2, kind: input, shape index: {}]   ;;  %s1912_s3 = inlined_call_operand.vmem [shape: f32[1,96], index: 3, kind: input, shape index: {}]   ;;  %s1913_s4 = inlined_call_operand.vmem [shape: f32[32,96], index: 4, kind: input, shape index: {}]   ;;  %s1914_s5 = inlined_call_operand.vmem [shape: f32[1,96], index: 5, kind: input, shape index: {}]   ;;  %s1915_s6 = inlined_call_operand.vmem [shape: f32[32,128], index: 6, kind: input, shape index: {}]   ;;  %s1916_s7 = inlined_call_operand.vmem [shape: f32[1,128], index: 7, kind: input, shape index: {}]   ;;  %s1917_s8 = inlined_call_operand.hbm [shape: f32[64,128], index: 8, kind: output, shape index: {}]  }
   0x1   :  { %14 = vsyncpa [#allocation6], 0  ;;  %s1609_s27 = smov [#allocation4]   ;;  %s1561_s9 = scalar_lea.hbm %s1910_s1, 128 }
   0x2   :  { %s23_s28 = sshll.u32 %s1609_s27, 4  ;;  %p1562_p0 = scmp.ne.s32.totalorder %s1910_s1, %s1561_s9  ;;  %s24_s28 = int_to_ptr.vmem [resolvable:$true] %s23_s28 }
   0x3   :  { %p1565_p1 = scmp.lt.u32.totalorder %s1561_s9, %s1910_s1 }
   0x5   :  { %p1567_p2 = pnand %p1565_p1, %p1562_p0 }
   0x7   :  { %1570 = shalt.err (!%p1567_p2)
}
   0x8   :  { %s1571_s14 = scalar_lea.vmem %s24_s28, 128  ;;  %p1576_p4 = scmp.lt.s32.totalorder %s24_s28, %s24_s28 }
   0x9   :  { %p1572_p3 = scmp.ne.s32.totalorder %s24_s28, %s1571_s14  ;;  %p1577_p5 = scmp.lt.s32.totalorder %s1571_s14, %s1571_s14 }
   0xb   :  { %p1578_p6 = por %p1577_p5, %p1576_p4 }
   0xd   :  { %p1579_p7 = pnand %p1578_p6, %p1572_p3 }
   0xf   :  { %1582 = shalt.err (!%p1579_p7)
}
  0x10   :  { %26 = dma.hbm_to_vmem [thread:$0]  %s1910_s1, 128, %s24_s28, [#allocation5]  }
  0x11   :  { %1605 = dma.done.wait [#allocation5], 128  }
  0x12   :  { %1606 = vsyncadd [#allocation5], 4294967168  ;;  %vm59_vm0 = vcmask 130048   ;;  %v50_v0 = vld [vmem:[%s1911_s2] sm:$0xff]  ;;  %v51_v1 = vld [vmem:[%s1911_s2 + $0x8] sm:$0xff]  ;;  %v1610_v10 = vmov 0.0|0.0  }
  0x13   :  { %v42_v2 = vld [vmem:[%s1909_s0] sm:$0xff]  ;;  %v1441_v3 = vpack.c.bf16 %v51_v1, %v50_v0  ;;  %v199_v6 = vld [vmem:[%s1913_s4 + $0x8] sm:$0xff]  ;;  %v48_v11 = vld [vmem:[%s1909_s0 + $0x30] sm:$0xff]  ;;  %vm1611_vm1 = vmmov 0   ;;  %v1612_v16 = vmov 0.0   ;;  %vm211_vm2 = vcmask 261120  }
  0x14   :  { %1321 = vmatprep.mubr.msk.f32.mxu0 %vm59_vm0, %v42_v2  ;;  %v46_v4 = vld [vmem:[%s1909_s0 + $0x20] sm:$0xff]  ;;  %v43_v7 = vld [vmem:[%s1909_s0 + $0x8] sm:$0xff]  ;;  %v200_v12 = vld [vmem:[%s1913_s4 + $0x10] sm:$0xff]  ;;  %vm189_vm3 = vcmask 785408   ;;  %s1613_s19 = smov 64   ;;  %s1615_s20 = smov 32  }
  0x15   :  { %1327 = vmatprep.mubr.msk.f32.mxu1 %vm59_vm0, %v46_v4  ;;  %v198_v5 = vld [vmem:[%s1913_s4] sm:$0xff]  ;;  %1442 = vmatprep.subr.bf16.mxu0 %v1441_v3  ;;  %v47_v8 = vld [vmem:[%s1909_s0 + $0x28] sm:$0xff]  ;;  %v201_v13 = vld [vmem:[%s1913_s4 + $0x18] sm:$0xff] }
  0x16   :  { %1501 = vmatprep.subr.bf16.mxu1 %v1441_v3  ;;  %1444 = vmatpush3.bf16.msra.mxu0 %v1441_v3  ;;  %v1702_v9 = vpack.c.bf16 %v199_v6, %v198_v5  ;;  %v49_v14 = vld [vmem:[%s1909_s0 + $0x38] sm:$0xff]  ;;  %v1722_v15 = vpack.c.bf16 %v201_v13, %v200_v12  ;;  %v203_v17 = vld [vmem:[#allocation4] sm:$0xff]  ;;  %v44_v2 = vld [vmem:[%s1909_s0 + $0x10] sm:$0xff] }
  0x17   :  { %1502 = vmatpush3.bf16.msra.mxu1 %v1441_v3  ;;  %1457 = vmatprep.subr.bf16.mxu0 %v1610_v10  ;;  %v1744_v18 = vld [vmem:[%s1912_s3] ss:$0 sm:$0xff]  ;;  %v45_v3 = vld [vmem:[%s1909_s0 + $0x18] sm:$0xff] }
  0x18   :  { %1445 = vmatprep.subr.bf16.mxu1 %v1610_v10  ;;  %v1759_v31 = vld [vmem:[%s1914_s5] ss:$0 sm:$0xff]  ;;  %s1614_s5 = smov 96  }
  0x19   :  { %1322 = vmatmul.mubr.msk.f32.vlgmr.msra.gmra.mrb[0].mxu0 %vm59_vm0, %v43_v7 }
  0x1a   :  { %1328 = vmatmul.mubr.msk.f32.vlgmr.msra.gmra.mrb[0].mxu1 %vm59_vm0, %v47_v8  ;;  %1459 = vmatpush3.bf16.msra.mxu0 %v1702_v9 }
  0x1b   :  { %1447 = vmatpush3.bf16.msra.mxu1 %v1702_v9  ;;  %1330 = vmatprep.mubr.msk.f32.mxu1 %vm59_vm0, %v48_v11 }
  0x1c   :  { %1448 = vmatprep.subr.bf16.mxu1 %v1610_v10  ;;  %1460 = vmatprep.subr.bf16.mxu0 %v1610_v10 }
  0x1d   :  { %1324 = vmatprep.mubr.msk.f32.mxu0 %vm59_vm0, %v44_v2 }
  0x1e   :  { %1331 = vmatmul.mubr.msk.f32.gmra.mrb[2].mxu1 %vm59_vm0, %v49_v14  ;;  %1462 = vmatpush3.bf16.msra.mxu0 %v1722_v15 }
  0x1f   :  { %1450 = vmatpush3.bf16.msra.mxu1 %v1722_v15  ;;  %1341 = vmatprep.mubr.msk.f32.mxu1 %vm1611_vm1, %v1612_v16 }
  0x20   :  { %1451 = vmatprep.subr.bf16.mxu1 %v1610_v10  ;;  %1469 = vmatprep.subr.bf16.mxu0 %v1610_v10 }
  0x21   :  { %1325 = vmatmul.mubr.msk.f32.gmra.mrb[2].mxu0 %vm59_vm0, %v45_v3 }
  0x22   :  { %1342 = vmatmul.mubr.msk.f32.vlgmr.msra.gmra.mrb[4].mxu1 %vm211_vm2, %v203_v17  ;;  %1363 = vmatprep.mubr.msk.f32.mxu0 %vm1611_vm1, %v1612_v16 }
  0x23   :  { %1453 = vmatpush3.bf16.msra.mxu1 %v1702_v9  ;;  %1352 = vmatprep.mubr.msk.f32.mxu1 %vm1611_vm1, %v1612_v16 }
  0x24   :  { %1454 = vmatprep.subr.bf16.mxu1 %v1610_v10 }
  0x27   :  { %1456 = vmatpush3.bf16.msra.mxu1 %v1722_v15 }
  0x28   :  { %1463 = vmatprep.subr.bf16.mxu1 %v1610_v10 }
  0xec   :  { %v1323_v19 = vpop.f32.mrb[0].mxu0 }
  0xed   :  { %v1329_v20 = vpop.f32.mrb[0].mxu1  ;;  %v156_v21 = vadd.f32 %v1323_v19, %v1744_v18  ;;  %v150_v23 = vpop.f32.mrb[1].mxu0 }
  0xee   :  { %v176_v22 = vadd.f32 %v1329_v20, %v1744_v18  ;;  %v170_v24 = vpop.f32.mrb[1].mxu1  ;;  %v151_v25 = vadd.f32 %v1744_v18, %v150_v23 }
  0xef   :  { %v171_v26 = vadd.f32 %v1744_v18, %v170_v24  ;;  %191 = vst.msk [vmem:[#allocation2 + $0x8] sm:$0xff] %vm189_vm3, %v156_v21 }
  0xf0   :  { %195 = vst.msk [vmem:[#allocation2 + $0x28] sm:$0xff] %vm189_vm3, %v176_v22  ;;  %190 = vst.msk [vmem:[#allocation2] sm:$0xff] %vm189_vm3, %v151_v25 }
  0xf1   :  { %194 = vst.msk [vmem:[#allocation2 + $0x20] sm:$0xff] %vm189_vm3, %v171_v26  ;;  %v1332_v27 = vpop.f32.mrb[2].mxu1 }
  0xf2   :  { %v186_v28 = vadd.f32 %v1332_v27, %v1744_v18  ;;  %v180_v29 = vpop.f32.mrb[3].mxu1 }
  0xf3   :  { %v181_v30 = vadd.f32 %v1744_v18, %v180_v29 }
  0xf4   :  { %197 = vst.msk [vmem:[#allocation2 + $0x38] sm:$0xff] %vm189_vm3, %v186_v28  ;;  %v1326_v12 = vpop.f32.mrb[2].mxu0 }
  0xf5   :  { %196 = vst.msk [vmem:[#allocation2 + $0x30] sm:$0xff] %vm189_vm3, %v181_v30  ;;  %v281_v32 = vpop.f32.mrb[4].mxu1  ;;  %v166_v13 = vadd.f32 %v1326_v12, %v1744_v18  ;;  %v160_v14 = vpop.f32.mrb[3].mxu0 }
  0xf6   :  { %v282_v33 = vadd.f32 %v1759_v31, %v281_v32  ;;  %v1343_v34 = vpop.f32.mrb[5].mxu1  ;;  %v319_v56 = vld [vmem:[#allocation2 + $0x8] sm:$0xff] }
  0xf7   :  { %v204_v35 = vld [vmem:[#allocation2] sm:$0xff]  ;;  %193 = vst.msk [vmem:[#allocation2 + $0x18] sm:$0xff] %vm189_vm3, %v166_v13 }
  0xf8   :  { %293 = vrot.lane.b32.xlu0 %v282_v33, %s1613_s19  ;;  %v285_v36 = vadd.f32 %v282_v33, %v204_v35 }
  0xfa   :  { %v1231_v37 = vmul.f32 -1.442695, %v285_v36 }
  0xfc   :  { %1513 = vpow2.f32 %v1231_v37 }
 0x106   :  { %v1514_v38 = vpop.eup %1513 }
 0x107   :  { %v289_v39 = vadd.f32 1.0, %v1514_v38 }
 0x109   :  { %1515 = vrcp.f32 %v289_v39 }
 0x113   :  { %v1516_v40 = vpop.eup %1515 }
 0x114   :  { %v303_v47 = vsub.f32 1.0, %v1516_v40 }
 0x16a   :  { %v294_v41 = vpop.permute.xlu0 %293 }
 0x16b   :  { %v296_v42 = vmul.f32 %v1516_v40, %v294_v41 }
 0x16d   :  { %298 = vrot.lane.b32.xlu0 %v296_v42, %s1613_s19 }
 0x1df   :  { %v299_v43 = vpop.permute.xlu0 %298 }
 0x1e0   :  { %v301_v44 = vadd.f32 %v299_v43, %v204_v35  ;;  %v527_v43 = vld [vmem:[#allocation2 + $0x18] sm:$0xff] }
 0x1e2   :  { %1517 = vtanh.f32 %v301_v44 }
 0x1ec   :  { %v1518_v45 = vpop.eup %1517 }
 0x1ed   :  { %305 = vrot.lane.b32.xlu1 %v1518_v45, %s1614_s5 }
 0x1f1   :  { %309 = vrot.lane.b32.xlu1 %v203_v17, %s1615_s20  ;;  %v161_v17 = vadd.f32 %v1744_v18, %v160_v14 }
 0x1f3   :  { %192 = vst.msk [vmem:[#allocation2 + $0x10] sm:$0xff] %vm189_vm3, %v161_v17 }
 0x1fa   :  { %v423_v22 = vld [vmem:[#allocation2 + $0x10] sm:$0xff] }
 0x25f   :  { %v306_v46 = vpop.permute.xlu1 %305 }
 0x260   :  { %v308_v49 = vmul.f32 %v306_v46, %v303_v47 }
 0x263   :  { %v310_v48 = vpop.permute.xlu1 %309 }
 0x264   :  { %v312_v50 = vmul.f32 %v1516_v40, %v310_v48 }
 0x266   :  { %v313_v51 = vadd.f32 %v312_v50, %v308_v49 }
 0x268   :  { %315 = vrot.lane.b32.xlu0 %v313_v51, %s1614_s5 }
 0x2da   :  { %v316_v52 = vpop.permute.xlu0 %315 }
 0x2db   :  { %318 = vst.msk [vmem:[#allocation3] sm:$0xff] %vm211_vm2, %v316_v52  ;;  %1353 = vmatmul.mubr.msk.f32.vlgmr.msra.gmra.mrb[6].mxu1 %vm211_vm2, %v316_v52 }
 0x2dc   :  { %1465 = vmatpush3.bf16.msra.mxu1 %v1702_v9  ;;  %1374 = vmatprep.mubr.msk.f32.mxu1 %vm1611_vm1, %v1612_v16 }
 0x2dd   :  { %1466 = vmatprep.subr.bf16.mxu1 %v1610_v10 }
 0x2e0   :  { %1468 = vmatpush3.bf16.msra.mxu1 %v1722_v15 }
 0x2e1   :  { %1475 = vmatprep.subr.bf16.mxu1 %v1610_v10 }
 0x3ae   :  { %v388_v53 = vpop.f32.mrb[6].mxu1 }
 0x3af   :  { %v389_v54 = vadd.f32 %v1759_v31, %v388_v53  ;;  %v1354_v55 = vpop.f32.mrb[7].mxu1 }
 0x3b1   :  { %400 = vrot.lane.b32.xlu1 %v389_v54, %s1613_s19  ;;  %v392_v57 = vadd.f32 %v389_v54, %v319_v56 }
 0x3b3   :  { %v1233_v58 = vmul.f32 -1.442695, %v392_v57 }
 0x3b5   :  { %1519 = vpow2.f32 %v1233_v58 }
 0x3bf   :  { %v1520_v59 = vpop.eup %1519 }
 0x3c0   :  { %v396_v60 = vadd.f32 1.0, %v1520_v59 }
 0x3c2   :  { %1521 = vrcp.f32 %v396_v60 }
 0x3cc   :  { %v1522_v61 = vpop.eup %1521 }
 0x3cd   :  { %v410_v5 = vsub.f32 1.0, %v1522_v61  ;;  %v416_v7 = vmul.f32 %v1522_v61, %v313_v51 }
 0x423   :  { %v401_v62 = vpop.permute.xlu1 %400 }
 0x424   :  { %v403_v63 = vmul.f32 %v1522_v61, %v401_v62 }
 0x426   :  { %405 = vrot.lane.b32.xlu0 %v403_v63, %s1613_s19  ;;  %v631_v63 = vld [vmem:[#allocation2 + $0x20] sm:$0xff] }
 0x498   :  { %v406_v0 = vpop.permute.xlu0 %405 }
 0x499   :  { %v408_v1 = vadd.f32 %v406_v0, %v319_v56 }
 0x49b   :  { %1523 = vtanh.f32 %v408_v1 }
 0x4a5   :  { %v1524_v4 = vpop.eup %1523 }
 0x4a6   :  { %412 = vrot.lane.b32.xlu1 %v1524_v4, %s1614_s5 }
 0x518   :  { %v413_v6 = vpop.permute.xlu1 %412 }
 0x519   :  { %v415_v8 = vmul.f32 %v413_v6, %v410_v5 }
 0x51b   :  { %v417_v11 = vadd.f32 %v416_v7, %v415_v8 }
 0x51d   :  { %419 = vrot.lane.b32.xlu0 %v417_v11, %s1614_s5 }
 0x58f   :  { %v420_v19 = vpop.permute.xlu0 %419 }
 0x590   :  { %422 = vst.msk [vmem:[#allocation3 + $0x8] sm:$0xff] %vm211_vm2, %v420_v19  ;;  %1364 = vmatmul.mubr.msk.f32.vlgmr.msra.gmra.mrb[4].mxu0 %vm211_vm2, %v420_v19 }
 0x591   :  { %1471 = vmatpush3.bf16.msra.mxu0 %v1702_v9  ;;  %1385 = vmatprep.mubr.msk.f32.mxu0 %vm1611_vm1, %v1612_v16 }
 0x592   :  { %1472 = vmatprep.subr.bf16.mxu0 %v1610_v10 }
 0x595   :  { %1474 = vmatpush3.bf16.msra.mxu0 %v1722_v15 }
 0x596   :  { %1481 = vmatprep.subr.bf16.mxu0 %v1610_v10 }
 0x663   :  { %v492_v18 = vpop.f32.mrb[4].mxu0 }
 0x664   :  { %v493_v20 = vadd.f32 %v1759_v31, %v492_v18  ;;  %v1365_v21 = vpop.f32.mrb[5].mxu0 }
 0x666   :  { %504 = vrot.lane.b32.xlu1 %v493_v20, %s1613_s19  ;;  %v496_v23 = vadd.f32 %v493_v20, %v423_v22 }
 0x668   :  { %v1235_v24 = vmul.f32 -1.442695, %v496_v23  ;;  %v735_v23 = vld [vmem:[#allocation2 + $0x28] sm:$0xff] }
 0x66a   :  { %1525 = vpow2.f32 %v1235_v24 }
 0x674   :  { %v1526_v25 = vpop.eup %1525 }
 0x675   :  { %v500_v26 = vadd.f32 1.0, %v1526_v25 }
 0x677   :  { %1527 = vrcp.f32 %v500_v26 }
 0x681   :  { %v1528_v27 = vpop.eup %1527 }
 0x682   :  { %v514_v34 = vsub.f32 1.0, %v1528_v27  ;;  %v520_v36 = vmul.f32 %v1528_v27, %v417_v11 }
 0x6d8   :  { %v505_v28 = vpop.permute.xlu1 %504 }
 0x6d9   :  { %v507_v29 = vmul.f32 %v1528_v27, %v505_v28 }
 0x6db   :  { %509 = vrot.lane.b32.xlu0 %v507_v29, %s1613_s19  ;;  %v1055_v29 = vld [vmem:[%s1915_s6] sm:$0xff] }
 0x74d   :  { %v510_v30 = vpop.permute.xlu0 %509 }
 0x74e   :  { %v512_v32 = vadd.f32 %v510_v30, %v423_v22  ;;  %v1056_v30 = vld [vmem:[%s1915_s6 + $0x8] sm:$0xff] }
 0x750   :  { %1529 = vtanh.f32 %v512_v32  ;;  %v1493_v32 = vpack.c.bf16 %v1056_v30, %v1055_v29 }
 0x75a   :  { %v1530_v33 = vpop.eup %1529 }
 0x75b   :  { %516 = vrot.lane.b32.xlu1 %v1530_v33, %s1614_s5 }
 0x7cd   :  { %v517_v35 = vpop.permute.xlu1 %516 }
 0x7ce   :  { %v519_v37 = vmul.f32 %v517_v35, %v514_v34 }
 0x7d0   :  { %v521_v38 = vadd.f32 %v520_v36, %v519_v37 }
 0x7d2   :  { %523 = vrot.lane.b32.xlu0 %v521_v38, %s1614_s5 }
 0x844   :  { %v524_v39 = vpop.permute.xlu0 %523 }
 0x845   :  { %526 = vst.msk [vmem:[#allocation3 + $0x10] sm:$0xff] %vm211_vm2, %v524_v39  ;;  %1375 = vmatmul.mubr.msk.f32.vlgmr.msra.gmra.mrb[8].mxu1 %vm211_vm2, %v524_v39  ;;  %v1057_v39 = vld [vmem:[%s1915_s6 + $0x10] sm:$0xff] }
 0x846   :  { %1477 = vmatpush3.bf16.msra.mxu1 %v1702_v9  ;;  %1396 = vmatprep.mubr.msk.f32.mxu1 %vm1611_vm1, %v1612_v16 }
 0x847   :  { %1478 = vmatprep.subr.bf16.mxu1 %v1610_v10 }
 0x84a   :  { %1480 = vmatpush3.bf16.msra.mxu1 %v1722_v15 }
 0x84b   :  { %1487 = vmatprep.subr.bf16.mxu1 %v1610_v10 }
 0x918   :  { %v596_v40 = vpop.f32.mrb[8].mxu1 }
 0x919   :  { %v597_v41 = vadd.f32 %v1759_v31, %v596_v40  ;;  %v1376_v42 = vpop.f32.mrb[9].mxu1  ;;  %v1058_v40 = vld [vmem:[%s1915_s6 + $0x18] sm:$0xff] }
 0x91b   :  { %608 = vrot.lane.b32.xlu1 %v597_v41, %s1613_s19  ;;  %v600_v44 = vadd.f32 %v597_v41, %v527_v43  ;;  %v1497_v41 = vpack.c.bf16 %v1058_v40, %v1057_v39 }
 0x91d   :  { %v1237_v45 = vmul.f32 -1.442695, %v600_v44  ;;  %v1048_v44 = vld [vmem:[#allocation3 + $0x8] sm:$0xff] }
 0x91f   :  { %1531 = vpow2.f32 %v1237_v45  ;;  %v1049_v45 = vld [vmem:[#allocation3 + $0x10] sm:$0xff] }
 0x929   :  { %v1532_v46 = vpop.eup %1531 }
 0x92a   :  { %v604_v47 = vadd.f32 1.0, %v1532_v46 }
 0x92c   :  { %1533 = vrcp.f32 %v604_v47 }
 0x936   :  { %v1534_v48 = vpop.eup %1533 }
 0x937   :  { %v618_v54 = vsub.f32 1.0, %v1534_v48  ;;  %v624_v56 = vmul.f32 %v1534_v48, %v521_v38 }
 0x98d   :  { %v609_v49 = vpop.permute.xlu1 %608 }
 0x98e   :  { %v611_v50 = vmul.f32 %v1534_v48, %v609_v49 }
 0x990   :  { %613 = vrot.lane.b32.xlu0 %v611_v50, %s1613_s19 }
 0xa02   :  { %v614_v51 = vpop.permute.xlu0 %613 }
 0xa03   :  { %v616_v52 = vadd.f32 %v614_v51, %v527_v43  ;;  %v1047_v43 = vld [vmem:[#allocation3] sm:$0xff] }
 0xa05   :  { %1535 = vtanh.f32 %v616_v52  ;;  %v1873_v52 = vld [vmem:[%s1916_s7] ss:$0 sm:$0xff]  ;;  %s1616_s7 = smov [#allocation7]  }
 0xa06   :  { %s1208_s9 = sshll.u32 %s1616_s7, 4  ;;  %s1209_s9 = int_to_ptr.vmem [resolvable:$true] %s1208_s9 }
 0xa07   :  { %s1583_s10 = scalar_lea.vmem %s1209_s9, 1024  ;;  %p1588_p9 = scmp.lt.s32.totalorder %s1209_s9, %s1209_s9 }
 0xa08   :  { %p1584_p8 = scmp.ne.s32.totalorder %s1209_s9, %s1583_s10  ;;  %p1589_p10 = scmp.lt.s32.totalorder %s1583_s10, %s1583_s10 }
 0xa0a   :  { %p1590_p11 = por %p1589_p10, %p1588_p9 }
 0xa0c   :  { %p1591_p12 = pnand %p1590_p11, %p1584_p8 }
 0xa0f   :  { %v1536_v53 = vpop.eup %1535 }
 0xa10   :  { %620 = vrot.lane.b32.xlu1 %v1536_v53, %s1614_s5 }
 0xa82   :  { %v621_v55 = vpop.permute.xlu1 %620 }
 0xa83   :  { %v623_v57 = vmul.f32 %v621_v55, %v618_v54 }
 0xa85   :  { %v625_v58 = vadd.f32 %v624_v56, %v623_v57 }
 0xa87   :  { %627 = vrot.lane.b32.xlu0 %v625_v58, %s1614_s5 }
 0xaf9   :  { %v628_v59 = vpop.permute.xlu0 %627 }
 0xafa   :  { %630 = vst.msk [vmem:[#allocation3 + $0x18] sm:$0xff] %vm211_vm2, %v628_v59  ;;  %1386 = vmatmul.mubr.msk.f32.vlgmr.msra.gmra.mrb[6].mxu0 %vm211_vm2, %v628_v59 }
 0xafb   :  { %1483 = vmatpush3.bf16.msra.mxu0 %v1702_v9  ;;  %1407 = vmatprep.mubr.msk.f32.mxu0 %vm1611_vm1, %v1612_v16 }
 0xafc   :  { %1484 = vmatprep.subr.bf16.mxu0 %v1610_v10 }
 0xaff   :  { %1486 = vmatpush3.bf16.msra.mxu0 %v1722_v15 }
 0xb00   :  { %1494 = vmatprep.subr.bf16.mxu0 %v1493_v32 }
 0xb01   :  { %v1050_v46 = vld [vmem:[#allocation3 + $0x18] sm:$0xff] }
 0xbcd   :  { %v700_v60 = vpop.f32.mrb[6].mxu0 }
 0xbce   :  { %v701_v61 = vadd.f32 %v1759_v31, %v700_v60  ;;  %v1387_v62 = vpop.f32.mrb[7].mxu0 }
 0xbd0   :  { %712 = vrot.lane.b32.xlu1 %v701_v61, %s1613_s19  ;;  %v704_v0 = vadd.f32 %v701_v61, %v631_v63 }
 0xbd2   :  { %v1239_v1 = vmul.f32 -1.442695, %v704_v0 }
 0xbd4   :  { %1537 = vpow2.f32 %v1239_v1  ;;  %v839_v1 = vld [vmem:[#allocation2 + $0x30] sm:$0xff] }
 0xbde   :  { %v1538_v2 = vpop.eup %1537 }
 0xbdf   :  { %v708_v3 = vadd.f32 1.0, %v1538_v2 }
 0xbe1   :  { %1539 = vrcp.f32 %v708_v3 }
 0xbeb   :  { %v1540_v4 = vpop.eup %1539 }
 0xbec   :  { %v722_v12 = vsub.f32 1.0, %v1540_v4  ;;  %v728_v14 = vmul.f32 %v1540_v4, %v625_v58 }
 0xc42   :  { %v713_v5 = vpop.permute.xlu1 %712 }
 0xc43   :  { %v715_v6 = vmul.f32 %v1540_v4, %v713_v5 }
 0xc45   :  { %717 = vrot.lane.b32.xlu0 %v715_v6, %s1613_s19 }
 0xcb7   :  { %v718_v7 = vpop.permute.xlu0 %717 }
 0xcb8   :  { %v720_v8 = vadd.f32 %v718_v7, %v631_v63 }
 0xcba   :  { %1541 = vtanh.f32 %v720_v8 }
 0xcc4   :  { %v1542_v11 = vpop.eup %1541 }
 0xcc5   :  { %724 = vrot.lane.b32.xlu1 %v1542_v11, %s1614_s5 }
 0xd37   :  { %v725_v13 = vpop.permute.xlu1 %724 }
 0xd38   :  { %v727_v17 = vmul.f32 %v725_v13, %v722_v12 }
 0xd3a   :  { %v729_v19 = vadd.f32 %v728_v14, %v727_v17 }
 0xd3c   :  { %731 = vrot.lane.b32.xlu0 %v729_v19, %s1614_s5 }
 0xdae   :  { %v732_v18 = vpop.permute.xlu0 %731 }
 0xdaf   :  { %734 = vst.msk [vmem:[#allocation3 + $0x20] sm:$0xff] %vm211_vm2, %v732_v18  ;;  %1397 = vmatmul.mubr.msk.f32.vlgmr.msra.gmra.mrb[10].mxu1 %vm211_vm2, %v732_v18 }
 0xdb0   :  { %1489 = vmatpush3.bf16.msra.mxu1 %v1702_v9  ;;  %1418 = vmatprep.mubr.msk.f32.mxu1 %vm1611_vm1, %v1612_v16 }
 0xdb1   :  { %1490 = vmatprep.subr.bf16.mxu1 %v1610_v10 }
 0xdb4   :  { %1492 = vmatpush3.bf16.msra.mxu1 %v1722_v15 }
 0xdb6   :  { %v1051_v47 = vld [vmem:[#allocation3 + $0x20] sm:$0xff] }
 0xe82   :  { %v804_v20 = vpop.f32.mrb[10].mxu1 }
 0xe83   :  { %v805_v21 = vadd.f32 %v1759_v31, %v804_v20  ;;  %v1398_v22 = vpop.f32.mrb[11].mxu1 }
 0xe85   :  { %816 = vrot.lane.b32.xlu1 %v805_v21, %s1613_s19  ;;  %v808_v24 = vadd.f32 %v805_v21, %v735_v23 }
 0xe87   :  { %v1241_v25 = vmul.f32 -1.442695, %v808_v24 }
 0xe89   :  { %1543 = vpow2.f32 %v1241_v25 }
 0xe93   :  { %v1544_v26 = vpop.eup %1543 }
 0xe94   :  { %v812_v27 = vadd.f32 1.0, %v1544_v26  ;;  %v943_v26 = vld [vmem:[#allocation2 + $0x38] sm:$0xff] }
 0xe96   :  { %1545 = vrcp.f32 %v812_v27 }
 0xea0   :  { %v1546_v9 = vpop.eup %1545 }
 0xea1   :  { %v826_v34 = vsub.f32 1.0, %v1546_v9  ;;  %v832_v36 = vmul.f32 %v1546_v9, %v729_v19 }
 0xef7   :  { %v817_v28 = vpop.permute.xlu1 %816 }
 0xef8   :  { %v819_v16 = vmul.f32 %v1546_v9, %v817_v28 }
 0xefa   :  { %821 = vrot.lane.b32.xlu0 %v819_v16, %s1613_s19 }
 0xf6c   :  { %v822_v10 = vpop.permute.xlu0 %821 }
 0xf6d   :  { %v824_v15 = vadd.f32 %v822_v10, %v735_v23 }
 0xf6f   :  { %1547 = vtanh.f32 %v824_v15 }
 0xf79   :  { %v1548_v33 = vpop.eup %1547 }
 0xf7a   :  { %828 = vrot.lane.b32.xlu1 %v1548_v33, %s1614_s5 }
 0xfec   :  { %v829_v35 = vpop.permute.xlu1 %828 }
 0xfed   :  { %v831_v37 = vmul.f32 %v829_v35, %v826_v34 }
 0xfef   :  { %v1850_v38 = vadd.f32 %v832_v36, %v831_v37 }
 0xff1   :  { %835 = vrot.lane.b32.xlu0 %v1850_v38, %s1614_s5 }
0x1063   :  { %v836_v42 = vpop.permute.xlu0 %835 }
0x1064   :  { %838 = vst.msk [vmem:[#allocation3 + $0x28] sm:$0xff] %vm211_vm2, %v836_v42  ;;  %1408 = vmatmul.mubr.msk.f32.vlgmr.msra.gmra.mrb[8].mxu0 %vm211_vm2, %v836_v42 }
0x1065   :  { %1496 = vmatpush3.bf16.msra.mxu0 %v1493_v32  ;;  %1429 = vmatprep.mubr.msk.f32.mxu0 %vm211_vm2, %v1047_v43 }
0x1066   :  { %1498 = vmatprep.subr.bf16.mxu0 %v1497_v41 }
0x1069   :  { %1500 = vmatpush3.bf16.msra.mxu0 %v1497_v41 }
0x106b   :  { %v1052_v48 = vld [vmem:[#allocation3 + $0x28] sm:$0xff] }
0x106c   :  { %1430 = vmatmul.mubr.msk.f32.vlgmr.msra.gmra.mrb[10].mxu0 %vm211_vm2, %v1048_v44 }
0x106d   :  { %1432 = vmatprep.mubr.msk.f32.mxu0 %vm211_vm2, %v1049_v45 }
0x1070   :  { %1433 = vmatmul.mubr.msk.f32.gmra.mrb[12].mxu0 %vm211_vm2, %v1050_v46 }
0x1071   :  { %1435 = vmatprep.mubr.msk.f32.mxu0 %vm211_vm2, %v1051_v47 }
0x1074   :  { %1436 = vmatmul.mubr.msk.f32.gmra.mrb[14].mxu0 %vm211_vm2, %v1052_v48 }
0x1137   :  { %v908_v49 = vpop.f32.mrb[8].mxu0 }
0x1138   :  { %v909_v50 = vadd.f32 %v1759_v31, %v908_v49  ;;  %v1409_v51 = vpop.f32.mrb[9].mxu0 }
0x113a   :  { %920 = vrot.lane.b32.xlu1 %v909_v50, %s1613_s19  ;;  %v912_v2 = vadd.f32 %v909_v50, %v839_v1 }
0x113c   :  { %v1243_v3 = vmul.f32 -1.442695, %v912_v2 }
0x113e   :  { %1549 = vpow2.f32 %v1243_v3 }
0x113f   :  { %v1431_v53 = vpop.f32.mrb[10].mxu0 }
0x1140   :  { %v1162_v54 = vadd.f32 %v1431_v53, %v1873_v52  ;;  %v1156_v55 = vpop.f32.mrb[11].mxu0 }
0x1141   :  { %v1157_v56 = vadd.f32 %v1873_v52, %v1156_v55 }
0x1142   :  { %1196 = vst [vmem:[#allocation7 + $0x8] sm:$0xff] %v1162_v54 }
0x1143   :  { %1195 = vst [vmem:[#allocation7] sm:$0xff] %v1157_v56  ;;  %v1434_v57 = vpop.f32.mrb[12].mxu0 }
0x1144   :  { %v1172_v58 = vadd.f32 %v1434_v57, %v1873_v52  ;;  %v1166_v59 = vpop.f32.mrb[13].mxu0 }
0x1145   :  { %v1167_v60 = vadd.f32 %v1873_v52, %v1166_v59 }
0x1146   :  { %1198 = vst [vmem:[#allocation7 + $0x18] sm:$0xff] %v1172_v58 }
0x1147   :  { %1197 = vst [vmem:[#allocation7 + $0x10] sm:$0xff] %v1167_v60  ;;  %v1437_v61 = vpop.f32.mrb[14].mxu0 }
0x1148   :  { %v1182_v62 = vadd.f32 %v1437_v61, %v1873_v52  ;;  %v1176_v63 = vpop.f32.mrb[15].mxu0  ;;  %v1550_v4 = vpop.eup %1549 }
0x1149   :  { %v1177_v0 = vadd.f32 %v1873_v52, %v1176_v63  ;;  %v916_v5 = vadd.f32 1.0, %v1550_v4 }
0x114a   :  { %1200 = vst [vmem:[#allocation7 + $0x28] sm:$0xff] %v1182_v62 }
0x114b   :  { %1199 = vst [vmem:[#allocation7 + $0x20] sm:$0xff] %v1177_v0  ;;  %1551 = vrcp.f32 %v916_v5 }
0x1155   :  { %v1552_v6 = vpop.eup %1551 }
0x1156   :  { %v930_v14 = vsub.f32 1.0, %v1552_v6  ;;  %v936_v19 = vmul.f32 %v1552_v6, %v1850_v38 }
0x11ac   :  { %v921_v7 = vpop.permute.xlu1 %920 }
0x11ad   :  { %v923_v8 = vmul.f32 %v1552_v6, %v921_v7 }
0x11af   :  { %925 = vrot.lane.b32.xlu0 %v923_v8, %s1613_s19 }
0x1221   :  { %v926_v11 = vpop.permute.xlu0 %925 }
0x1222   :  { %v928_v12 = vadd.f32 %v926_v11, %v839_v1 }
0x1224   :  { %1553 = vtanh.f32 %v928_v12 }
0x122e   :  { %v1554_v13 = vpop.eup %1553 }
0x122f   :  { %932 = vrot.lane.b32.xlu1 %v1554_v13, %s1614_s5 }
0x12a1   :  { %v933_v17 = vpop.permute.xlu1 %932 }
0x12a2   :  { %v935_v18 = vmul.f32 %v933_v17, %v930_v14 }
0x12a4   :  { %v937_v20 = vadd.f32 %v936_v19, %v935_v18 }
0x12a6   :  { %939 = vrot.lane.b32.xlu0 %v937_v20, %s1614_s5 }
0x1318   :  { %v940_v21 = vpop.permute.xlu0 %939 }
0x1319   :  { %942 = vst.msk [vmem:[#allocation3 + $0x30] sm:$0xff] %vm211_vm2, %v940_v21  ;;  %1419 = vmatmul.mubr.msk.f32.vlgmr.msra.gmra.mrb[12].mxu1 %vm211_vm2, %v940_v21 }
0x1320   :  { %v1053_v22 = vld [vmem:[#allocation3 + $0x30] sm:$0xff] }
0x1321   :  { %1438 = vmatprep.mubr.msk.f32.mxu0 %vm211_vm2, %v1053_v22 }
0x13ec   :  { %v1012_v23 = vpop.f32.mrb[12].mxu1 }
0x13ed   :  { %v1013_v24 = vadd.f32 %v1759_v31, %v1012_v23  ;;  %v1420_v25 = vpop.f32.mrb[13].mxu1 }
0x13ef   :  { %1024 = vrot.lane.b32.xlu1 %v1013_v24, %s1613_s19  ;;  %v1016_v27 = vadd.f32 %v1013_v24, %v943_v26 }
0x13f1   :  { %v1245_v9 = vmul.f32 -1.442695, %v1016_v27 }
0x13f3   :  { %1555 = vpow2.f32 %v1245_v9 }
0x13fd   :  { %v1556_v28 = vpop.eup %1555 }
0x13fe   :  { %v1020_v16 = vadd.f32 1.0, %v1556_v28 }
0x1400   :  { %1557 = vrcp.f32 %v1020_v16 }
0x140a   :  { %v1558_v10 = vpop.eup %1557 }
0x140b   :  { %v1034_v31 = vsub.f32 1.0, %v1558_v10  ;;  %v1040_v35 = vmul.f32 %v1558_v10, %v937_v20 }
0x1461   :  { %v1025_v15 = vpop.permute.xlu1 %1024 }
0x1462   :  { %v1027_v29 = vmul.f32 %v1558_v10, %v1025_v15 }
0x1464   :  { %1029 = vrot.lane.b32.xlu0 %v1027_v29, %s1613_s19 }
0x14d6   :  { %v1030_v30 = vpop.permute.xlu0 %1029 }
0x14d7   :  { %v1032_v32 = vadd.f32 %v1030_v30, %v943_v26 }
0x14d9   :  { %1559 = vtanh.f32 %v1032_v32 }
0x14e3   :  { %v1560_v33 = vpop.eup %1559 }
0x14e4   :  { %1036 = vrot.lane.b32.xlu1 %v1560_v33, %s1614_s5 }
0x1556   :  { %v1037_v34 = vpop.permute.xlu1 %1036 }
0x1557   :  { %v1039_v36 = vmul.f32 %v1037_v34, %v1034_v31 }
0x1559   :  { %v1041_v37 = vadd.f32 %v1040_v35, %v1039_v36 }
0x155b   :  { %1043 = vrot.lane.b32.xlu0 %v1041_v37, %s1614_s5 }
0x15cd   :  { %v1044_v38 = vpop.permute.xlu0 %1043 }
0x15ce   :  { %1046 = vst.msk [vmem:[#allocation3 + $0x38] sm:$0xff] %vm211_vm2, %v1044_v38 }
0x15d5   :  { %v1054_v39 = vld [vmem:[#allocation3 + $0x38] sm:$0xff] }
0x15d6   :  { %1439 = vmatmul.mubr.msk.f32.gmra.mrb[16].mxu0 %vm211_vm2, %v1054_v39 }
0x16a9   :  { %v1440_v40 = vpop.f32.mrb[16].mxu0 }
0x16aa   :  { %v1192_v41 = vadd.f32 %v1440_v40, %v1873_v52  ;;  %v1186_v42 = vpop.f32.mrb[17].mxu0 }
0x16ab   :  { %v1187_v43 = vadd.f32 %v1873_v52, %v1186_v42 }
0x16ac   :  { %1202 = vst [vmem:[#allocation7 + $0x38] sm:$0xff] %v1192_v41 }
0x16ad   :  { %1201 = vst [vmem:[#allocation7 + $0x30] sm:$0xff] %v1187_v43 }
0x16ae   :  { %1594 = shalt.err (!%p1591_p12)
}
0x16af   :  { %s1595_s13 = scalar_lea.hbm %s1917_s8, 1024 }
0x16b0   :  { %p1596_p13 = scmp.ne.s32.totalorder %s1917_s8, %s1595_s13  ;;  %p1599_p0 = scmp.lt.u32.totalorder %s1595_s13, %s1917_s8 }
0x16b2   :  { %p1601_p1 = pnand %p1599_p0, %p1596_p13 }
0x16b4   :  { %1604 = shalt.err (!%p1601_p1)
}
0x16b5   :  { %s1617_s17 = smov 128   ;;  %s1618_s3 = smov 8  }
0x16b6   :  { %1214 = dma.vmem_to_hbm [thread:$0]  %s1209_s9, 1024, %s1917_s8, [#allocation6], %s1617_s17, %s1617_s17, %s1618_s3  }
0x16b7   :  { %1607 = dma.done.wait [#allocation6], 1024  }
0x16b8   :  { %1608 = vsyncadd [#allocation6], 4294966272 }
0x16b9   :  { %1218 = vsyncpa [#allocation5], 1 }
0x16ba   :  { %1219 = vsyncpa [#allocation6], 1 }

</bundles_post_ra>
